<compile_context>
chip_gen: v6e
topology: v6e:2x2x1
jax: 0.10.0
libtpu: 0.0.40
codegen_flags: <defaults>
</compile_context>

<pallas_src>
import functools

import jax
import jax.numpy as jnp
from jax.experimental import pallas as pl
from jax.experimental.pallas import tpu as pltpu

_H1, _H2 = 256, 512      # hidden sizes fixed by the PyTorch module
_LANE = 128
_MAX_TILE = 512          # largest batch tile (amortizes per-step overhead)


def _round_up(x, m):
    return (x + m - 1) // m * m


def _pick_tile(B):
    """Batch-tile size.

    - tiny batches (<=16): one block equal to the full batch dim
    - mid batches: split so there are >= 2 grid steps (v7x megacore sharding)
    - large batches: fixed 512-row tiles
    Tiles are multiples of 8 (f32 sublane) unless equal to the full batch dim.
    """
    if B <= 16:
        return B
    if B >= 2 * _MAX_TILE:
        return _MAX_TILE
    return min(_MAX_TILE, _round_up(pl.cdiv(B, 2), 8))


# --------------------------------------------------------------------------- #
# Kernel: fused 3-layer MLP (cast -> x @ W1 -> relu -> @ W2 -> relu -> @ W3 + b)
# --------------------------------------------------------------------------- #
def _dqn_kernel(x_ref, w1_ref, w2_ref, w3_ref, b_ref, o_ref):
    # Flattened state tile arrives f32; cast to bf16 on the VPU (fused, so the
    # activations only cross HBM once instead of twice).
    x = x_ref[...].astype(jnp.bfloat16)
    # fc1 + ReLU   (bf16 operands, f32 accumulation on the MXU)
    h1 = jnp.dot(x, w1_ref[...], preferred_element_type=jnp.float32)
    h1 = jnp.maximum(h1 + b_ref[:, :_H1], 0.0)
    # fc2 + ReLU
    h2 = jnp.dot(h1.astype(jnp.bfloat16), w2_ref[...],
                 preferred_element_type=jnp.float32)
    h2 = jnp.maximum(h2 + b_ref[:, _H1:_H1 + _H2], 0.0)
    # out (no activation); output slab is lane-dense (padded to 128 lanes)
    o = jnp.dot(h2.astype(jnp.bfloat16), w3_ref[...],
                preferred_element_type=jnp.float32)
    o_ref[...] = (o + b_ref[:, _H1 + _H2:]).astype(o_ref.dtype)


# --------------------------------------------------------------------------- #
# One-time parameter preparation (outside the jitted forward)
# --------------------------------------------------------------------------- #
def prepare_params(params):
    """Convert PyTorch-layout (out,in) f32 params to kernel layout once.

    Returns dict with:
      w1 (d_pad, 256) bf16   (fc1 contraction dim zero-padded to mult. of 256)
      w2 (256, 512)   bf16
      w3 (512, n_pad) bf16   (n_pad = 128-aligned)
      b  (1, 256+512+n_pad) f32  (concatenated, out-bias zero-padded)
    """
    n_actions = params["out_w"].shape[0]
    n_pad = _round_up(max(n_actions, _LANE), _LANE)
    d_in = params["fc1_w"].shape[1]
    d_pad = _round_up(d_in, 256)     # MXU-aligned contraction dim (768 for 16x16)

    w1 = jnp.pad(jnp.asarray(params["fc1_w"]).T,
                 ((0, d_pad - d_in), (0, 0))).astype(jnp.bfloat16)       # (d_pad, 256)
    w2 = jnp.asarray(params["fc2_w"]).T.astype(jnp.bfloat16)             # (256, 512)
    w3 = jnp.pad(jnp.asarray(params["out_w"]).T,
                 ((0, 0), (0, n_pad - n_actions))).astype(jnp.bfloat16)  # (512, n_pad)
    b3 = jnp.pad(jnp.asarray(params["out_b"]), (0, n_pad - n_actions))
    b = jnp.concatenate([jnp.asarray(params["fc1_b"]),
                         jnp.asarray(params["fc2_b"]),
                         b3]).astype(jnp.float32)[None, :]               # (1, 896)
    return {"w1": w1, "w2": w2, "w3": w3, "b": b}


# --------------------------------------------------------------------------- #
# Forward wrapper
# --------------------------------------------------------------------------- #
@functools.partial(jax.jit, static_argnames=("n_actions",))
def dqn_forward(state_nchw, prepped, *, n_actions):
    """state_nchw: (B, 3, H, W) float32; prepped: output of prepare_params."""
    B = state_nchw.shape[0]
    # torch.flatten(start_dim=1) == row-major reshape (free inside jit).
    # The f32->bf16 cast happens inside the kernel; no extra HBM pass here.
    x = state_nchw.reshape(B, -1)
    d_in = x.shape[1]

    w1, w2, w3, b = prepped["w1"], prepped["w2"], prepped["w3"], prepped["b"]
    d_pad, n_pad = w1.shape[0], w3.shape[1]
    if d_in != d_pad:
        # Only triggers for image sizes where 3*H*W is not already 256-aligned.
        x = jnp.pad(x, ((0, 0), (0, d_pad - d_in)))

    tile_b = _pick_tile(B)
    grid = (pl.cdiv(B, tile_b),)     # no batch padding: tail block is clipped

    out = pl.pallas_call(
        _dqn_kernel,
        out_shape=jax.ShapeDtypeStruct((B, n_pad), jnp.float32),
        grid=grid,
        in_specs=[
            pl.BlockSpec((tile_b, d_pad), lambda i: (i, 0)),   # activations: tiled
            pl.BlockSpec(w1.shape, lambda i: (0, 0)),          # weights: resident
            pl.BlockSpec(w2.shape, lambda i: (0, 0)),
            pl.BlockSpec(w3.shape, lambda i: (0, 0)),
            pl.BlockSpec(b.shape, lambda i: (0, 0)),           # fused bias row
        ],
        out_specs=pl.BlockSpec((tile_b, n_pad), lambda i: (i, 0)),
        compiler_params=pltpu.CompilerParams(
            dimension_semantics=("parallel",)),
    )(x, w1, w2, w3, b)

    return out[:, :n_actions]


# --------------------------------------------------------------------------- #
# Init + references for the self-test
# --------------------------------------------------------------------------- #
def init_params(key, in_features, n_actions):
    """Deterministic init matching PyTorch nn.Linear default (uniform +/-1/sqrt(fan_in))."""
    dims = [(256, in_features), (512, 256), (n_actions, 512)]
    names = ["fc1", "fc2", "out"]
    params = {}
    for name, (fo, fi) in zip(names, dims):
        key, kw, kb = jax.random.split(key, 3)
        bound = 1.0 / jnp.sqrt(fi)
        params[f"{name}_w"] = jax.random.uniform(
            kw, (fo, fi), jnp.float32, minval=-bound, maxval=bound)
        params[f"{name}_b"] = jax.random.uniform(
            kb, (fo,), jnp.float32, minval=-bound, maxval=bound)
    return params


def _reference_f32(state_nchw, params):
    """Exact PyTorch-semantics reference (all f32)."""
    x = state_nchw.reshape(state_nchw.shape[0], -1)
    h = jnp.maximum(x @ params["fc1_w"].T + params["fc1_b"], 0.0)
    h = jnp.maximum(h @ params["fc2_w"].T + params["fc2_b"], 0.0)
    return h @ params["out_w"].T + params["out_b"]


def _reference_bf16(state_nchw, prepped, n_actions):
    """Same math as the kernel (bf16 operands, f32 accumulation)."""
    B = state_nchw.shape[0]
    x = state_nchw.reshape(B, -1)
    d_pad = prepped["w1"].shape[0]
    if x.shape[1] != d_pad:
        x = jnp.pad(x, ((0, 0), (0, d_pad - x.shape[1])))
    x = x.astype(jnp.bfloat16)
    b = prepped["b"]
    h = jnp.maximum(jnp.dot(x, prepped["w1"],
                            preferred_element_type=jnp.float32) + b[:, :_H1], 0.0)
    h = jnp.maximum(jnp.dot(h.astype(jnp.bfloat16), prepped["w2"],
                            preferred_element_type=jnp.float32)
                    + b[:, _H1:_H1 + _H2], 0.0)
    o = jnp.dot(h.astype(jnp.bfloat16), prepped["w3"],
                preferred_element_type=jnp.float32) + b[:, _H1 + _H2:]
    return o[:, :n_actions]


if __name__ == "__main__":
    C, H, W = 3, 16, 16             # img_width=16, img_height=16 -> 3*16*16 = 768 features
    n_actions = 4

    key = jax.random.PRNGKey(0)
    key, kx1, kx2 = jax.random.split(key, 3)
    params = init_params(key, C * H * W, n_actions)
    prepped = prepare_params(params)            # one-time layout/dtype conversion

    # --- small batch (acting path, single grid step) -----------------------
    B = 2
    state = jax.random.normal(kx1, (B, C, H, W), jnp.float32)
    out = jax.block_until_ready(dqn_forward(state, prepped, n_actions=n_actions))
    assert out.shape == (B, n_actions)
    assert jnp.allclose(out, _reference_bf16(state, prepped, n_actions),
                        atol=1e-2, rtol=1e-2)
    assert jnp.allclose(out, _reference_f32(state, params),
                        atol=5e-2, rtol=5e-2)

    # --- mid batch (replay path: 2 grid steps, clipped tail block) ---------
    B2 = 50
    state2 = jax.random.normal(kx2, (B2, C, H, W), jnp.float32)
    out2 = jax.block_until_ready(dqn_forward(state2, prepped, n_actions=n_actions))
    assert out2.shape == (B2, n_actions)
    assert jnp.allclose(out2, _reference_bf16(state2, prepped, n_actions),
                        atol=1e-2, rtol=1e-2)
    assert jnp.allclose(out2, _reference_f32(state2, params),
                        atol=5e-2, rtol=5e-2)

    print("KERNEL_OK")
</pallas_src>

<mosaic_0001>
module attributes {stable_mosaic.version = 11 : i64} {
  func.func @_dqn_kernel(%arg0: i32, %arg1: memref<2x768xf32, #tpu.memory_space<vmem>>, %arg2: memref<768x256xbf16, #tpu.memory_space<vmem>>, %arg3: memref<256x512xbf16, #tpu.memory_space<vmem>>, %arg4: memref<512x128xbf16, #tpu.memory_space<vmem>>, %arg5: memref<1x896xf32, #tpu.memory_space<vmem>>, %arg6: memref<2x128xf32, #tpu.memory_space<vmem>>) attributes {dimension_semantics = [#tpu.dimension_semantics<parallel>], iteration_bounds = array<i64: 1>, scalar_prefetch = 0 : i64, scratch_operands = 0 : i64, tpu.core_type = #tpu.core_type<tc>, window_params = [{transform_indices = @transform_0, window_bounds = array<i64: 2, 768>}, {pipeline_mode = #tpu.pipeline_mode<synchronous>, transform_indices = @transform_1, window_bounds = array<i64: 768, 256>}, {pipeline_mode = #tpu.pipeline_mode<synchronous>, transform_indices = @transform_2, window_bounds = array<i64: 256, 512>}, {pipeline_mode = #tpu.pipeline_mode<synchronous>, transform_indices = @transform_3, window_bounds = array<i64: 512, 128>}, {pipeline_mode = #tpu.pipeline_mode<synchronous>, transform_indices = @transform_4, window_bounds = array<i64: 1, 896>}, {transform_indices = @transform_5, window_bounds = array<i64: 2, 128>}]} {
    %c0 = arith.constant 0 : index
    %c0_0 = arith.constant 0 : index
    %0 = vector.load %arg1[%c0, %c0_0] : memref<2x768xf32, #tpu.memory_space<vmem>>, vector<2x768xf32>
    %1 = arith.truncf %0 : vector<2x768xf32> to vector<2x768xbf16>
    %c0_1 = arith.constant 0 : index
    %c0_2 = arith.constant 0 : index
    %2 = vector.load %arg2[%c0_1, %c0_2] : memref<768x256xbf16, #tpu.memory_space<vmem>>, vector<768x256xbf16>
    %cst = arith.constant dense<0.000000e+00> : vector<2x256xf32>
    %3 = tpu.matmul %1, %2, %cst {dimension_numbers = #tpu.dot_dimension_numbers<[1], [0], [0], [1], [0, 0, 1, 1], [], []>} : vector<2x768xbf16>, vector<768x256xbf16>, vector<2x256xf32> -> vector<2x256xf32>
    %c0_3 = arith.constant 0 : index
    %c0_4 = arith.constant 0 : index
    %4 = vector.load %arg5[%c0_3, %c0_4] : memref<1x896xf32, #tpu.memory_space<vmem>>, vector<1x256xf32>
    %5 = vector.broadcast %4 : vector<1x256xf32> to vector<2x256xf32>
    %6 = arith.addf %3, %5 : vector<2x256xf32>
    %cst_5 = arith.constant 0.000000e+00 : f32
    %7 = vector.broadcast %cst_5 : f32 to vector<2x256xf32>
    %8 = arith.maximumf %6, %7 : vector<2x256xf32>
    %9 = arith.truncf %8 : vector<2x256xf32> to vector<2x256xbf16>
    %c0_6 = arith.constant 0 : index
    %c0_7 = arith.constant 0 : index
    %10 = vector.load %arg3[%c0_6, %c0_7] : memref<256x512xbf16, #tpu.memory_space<vmem>>, vector<256x512xbf16>
    %cst_8 = arith.constant dense<0.000000e+00> : vector<2x512xf32>
    %11 = tpu.matmul %9, %10, %cst_8 {dimension_numbers = #tpu.dot_dimension_numbers<[1], [0], [0], [1], [0, 0, 1, 1], [], []>} : vector<2x256xbf16>, vector<256x512xbf16>, vector<2x512xf32> -> vector<2x512xf32>
    %c0_9 = arith.constant 0 : index
    %c256 = arith.constant 256 : index
    %12 = vector.load %arg5[%c0_9, %c256] : memref<1x896xf32, #tpu.memory_space<vmem>>, vector<1x512xf32>
    %13 = vector.broadcast %12 : vector<1x512xf32> to vector<2x512xf32>
    %14 = arith.addf %11, %13 : vector<2x512xf32>
    %cst_10 = arith.constant 0.000000e+00 : f32
    %15 = vector.broadcast %cst_10 : f32 to vector<2x512xf32>
    %16 = arith.maximumf %14, %15 : vector<2x512xf32>
    %17 = arith.truncf %16 : vector<2x512xf32> to vector<2x512xbf16>
    %c0_11 = arith.constant 0 : index
    %c0_12 = arith.constant 0 : index
    %18 = vector.load %arg4[%c0_11, %c0_12] : memref<512x128xbf16, #tpu.memory_space<vmem>>, vector<512x128xbf16>
    %cst_13 = arith.constant dense<0.000000e+00> : vector<2x128xf32>
    %19 = tpu.matmul %17, %18, %cst_13 {dimension_numbers = #tpu.dot_dimension_numbers<[1], [0], [0], [1], [0, 0, 1, 1], [], []>} : vector<2x512xbf16>, vector<512x128xbf16>, vector<2x128xf32> -> vector<2x128xf32>
    %c0_14 = arith.constant 0 : index
    %c768 = arith.constant 768 : index
    %20 = vector.load %arg5[%c0_14, %c768] : memref<1x896xf32, #tpu.memory_space<vmem>>, vector<1x128xf32>
    %21 = vector.broadcast %20 : vector<1x128xf32> to vector<2x128xf32>
    %22 = arith.addf %19, %21 : vector<2x128xf32>
    %c0_15 = arith.constant 0 : index
    %c0_16 = arith.constant 0 : index
    %23 = vector.load %arg6[%c0_15, %c0_16] : memref<2x128xf32, #tpu.memory_space<vmem>>, vector<2x128xf32>
    tpu.vector_store %arg6[%c0_15, %c0_16], %22 {strides = array<i32>} : memref<2x128xf32, #tpu.memory_space<vmem>>, vector<2x128xf32>,
    return
  }
  func.func @transform_0(%arg0: i32) -> (i32, i32) {
    %c0_i32 = arith.constant 0 : i32
    %c0_i32_0 = arith.constant 0 : i32
    return %arg0, %c0_i32 : i32, i32
  }
  func.func @transform_1(%arg0: i32) -> (i32, i32) {
    %c0_i32 = arith.constant 0 : i32
    %c0_i32_0 = arith.constant 0 : i32
    %c0_i32_1 = arith.constant 0 : i32
    return %c0_i32, %c0_i32_0 : i32, i32
  }
  func.func @transform_2(%arg0: i32) -> (i32, i32) {
    %c0_i32 = arith.constant 0 : i32
    %c0_i32_0 = arith.constant 0 : i32
    %c0_i32_1 = arith.constant 0 : i32
    return %c0_i32, %c0_i32_0 : i32, i32
  }
  func.func @transform_3(%arg0: i32) -> (i32, i32) {
    %c0_i32 = arith.constant 0 : i32
    %c0_i32_0 = arith.constant 0 : i32
    %c0_i32_1 = arith.constant 0 : i32
    return %c0_i32, %c0_i32_0 : i32, i32
  }
  func.func @transform_4(%arg0: i32) -> (i32, i32) {
    %c0_i32 = arith.constant 0 : i32
    %c0_i32_0 = arith.constant 0 : i32
    %c0_i32_1 = arith.constant 0 : i32
    return %c0_i32, %c0_i32_0 : i32, i32
  }
  func.func @transform_5(%arg0: i32) -> (i32, i32) {
    %c0_i32 = arith.constant 0 : i32
    %c0_i32_0 = arith.constant 0 : i32
    return %arg0, %c0_i32 : i32, i32
  }
}

</mosaic_0001>

<bundles_post_ra>
// kernel: dqn_forward.1
= control target key start
LH: loop header
LB: loop body
LE: loop exit
PB: predicated region body
PF: predicated region fallthrough
CT: control target
= control target key end

     0   :  { %10 = vsyncpa [#allocation3], 0  ;;  %s2364_s0 = inlined_call_operand.vmem [shape: f32[2,768], index: 0, kind: input, shape index: {}]   ;;  %s2365_s1 = inlined_call_operand.hbm [shape: bf16[768,256], index: 1, kind: input, shape index: {}]   ;;  %s2366_s2 = inlined_call_operand.hbm [shape: bf16[256,512], index: 2, kind: input, shape index: {}]   ;;  %s2367_s3 = inlined_call_operand.hbm [shape: bf16[512,128], index: 3, kind: input, shape index: {}]   ;;  %s2368_s4 = inlined_call_operand.vmem [shape: f32[1,896], index: 4, kind: input, shape index: {}]   ;;  %s2369_s5 = inlined_call_operand.hbm [shape: f32[2,128], index: 5, kind: output, shape index: {}]  }
   0x1   :  { %11 = vsyncpa [#allocation6], 0 }
   0x2   :  { %12 = vsyncpa [#allocation4], 0  ;;  %s2283_s18 = smov [#allocation5]  }
   0x3   :  { %s32_s19 = sshll.u32 %s2283_s18, 4  ;;  %s33_s19 = int_to_ptr.vmem [resolvable:$true] %s32_s19 }
   0x4   :  { %s2205_s20 = scalar_lea.vmem %s33_s19, 8192  ;;  %p2210_p1 = scmp.lt.s32.totalorder %s33_s19, %s33_s19 }
   0x5   :  { %p2206_p0 = scmp.ne.s32.totalorder %s33_s19, %s2205_s20  ;;  %p2211_p2 = scmp.lt.s32.totalorder %s2205_s20, %s2205_s20 }
   0x7   :  { %p2212_p3 = por %p2211_p2, %p2210_p1 }
   0x9   :  { %p2213_p4 = pnand %p2212_p3, %p2206_p0 }
   0xb   :  { %2216 = shalt.err (!%p2213_p4)
}
   0xc   :  { %s2284_s21 = smov 256   ;;  %s2285_s22 = smov 16  }
   0xd   :  { %38 = dma.hbm_to_vmem [thread:$0]  %s2366_s2, 8192, %s33_s19, [#allocation6], %s2284_s21, %s2284_s21, %s2285_s22  }
   0xe   :  { %s2286_s25 = smov [#allocation2]  }
   0xf   :  { %s20_s26 = sshll.u32 %s2286_s25, 4  ;;  %s21_s26 = int_to_ptr.vmem [resolvable:$true] %s20_s26 }
  0x10   :  { %s2225_s27 = scalar_lea.vmem %s21_s26, 12288  ;;  %p2230_p6 = scmp.lt.s32.totalorder %s21_s26, %s21_s26 }
  0x11   :  { %p2226_p5 = scmp.ne.s32.totalorder %s21_s26, %s2225_s27  ;;  %p2231_p7 = scmp.lt.s32.totalorder %s2225_s27, %s2225_s27 }
  0x13   :  { %p2232_p8 = por %p2231_p7, %p2230_p6 }
  0x15   :  { %p2233_p9 = pnand %p2232_p8, %p2226_p5 }
  0x17   :  { %2236 = shalt.err (!%p2233_p9)
}
  0x18   :  { %s2287_s28 = smov 128   ;;  %s2288_s29 = smov 8  }
  0x19   :  { %26 = dma.hbm_to_vmem [thread:$0]  %s2365_s1, 12288, %s21_s26, [#allocation3], %s2287_s28, %s2287_s28, %s2288_s29  }
  0x1a   :  { %s2289_s7 = smov [#allocation7]  }
  0x1b   :  { %s44_s8 = sshll.u32 %s2289_s7, 4  ;;  %s45_s8 = int_to_ptr.vmem [resolvable:$true] %s44_s8 }
  0x1c   :  { %s2245_s2 = scalar_lea.vmem %s45_s8, 4096  ;;  %p2250_p11 = scmp.lt.s32.totalorder %s45_s8, %s45_s8 }
  0x1d   :  { %p2246_p10 = scmp.ne.s32.totalorder %s45_s8, %s2245_s2  ;;  %p2251_p12 = scmp.lt.s32.totalorder %s2245_s2, %s2245_s2 }
  0x1f   :  { %p2252_p13 = por %p2251_p12, %p2250_p11 }
  0x21   :  { %p2253_p0 = pnand %p2252_p13, %p2246_p10 }
  0x23   :  { %2256 = shalt.err (!%p2253_p0)
}
  0x24   :  { %s2290_s9 = smov 64   ;;  %s2291_s10 = smov 4  }
  0x25   :  { %50 = dma.hbm_to_vmem [thread:$0]  %s2367_s3, 4096, %s45_s8, [#allocation6], %s2290_s9, %s2290_s9, %s2291_s10  }
  0x26   :  { %2277 = dma.done.wait [#allocation3], 12288  }
  0x27   :  { %2278 = vsyncadd [#allocation3], 4294955008 }
  0x28   :  { %2279 = dma.done.wait [#allocation6], 12288  }
  0x29   :  { %2280 = vsyncadd [#allocation6], 4294955008  ;;  %v1924_v0 = vld [vmem:[#allocation2 + $0x74] ss:$8 sps:$4 sm:$0xff]   ;;  %v1926_v1 = vld [vmem:[#allocation2 + $0x70] ss:$8 sps:$4 sm:$0xff]   ;;  %v71_v37 = vlaneseq }
  0x2a   :  { %692 = vmatprep.subr.bf16.mxu0 %v1924_v0  ;;  %v1927_v2 = vld [vmem:[#allocation2 + $0x174] ss:$8 sps:$4 sm:$0xff]   ;;  %v1929_v3 = vld [vmem:[#allocation2 + $0x170] ss:$8 sps:$4 sm:$0xff]   ;;  %v1930_v4 = vld [vmem:[#allocation2 + $0x64] ss:$8 sps:$4 sm:$0xff]  }
  0x2b   :  { %693 = vmatpush1.bf16.msra.mxu0 %v1926_v1  ;;  %v1932_v5 = vld [vmem:[#allocation2 + $0x60] ss:$8 sps:$4 sm:$0xff]   ;;  %733 = vmatprep.subr.bf16.mxu1 %v1927_v2  ;;  %v1933_v6 = vld [vmem:[#allocation2 + $0x164] ss:$8 sps:$4 sm:$0xff]   ;;  %v1936_v8 = vld [vmem:[#allocation2 + $0x54] ss:$8 sps:$4 sm:$0xff]  }
  0x2c   :  { %734 = vmatpush1.bf16.msra.mxu1 %v1929_v3  ;;  %694 = vmatprep.subr.bf16.mxu0 %v1930_v4  ;;  %v1935_v7 = vld [vmem:[#allocation2 + $0x160] ss:$8 sps:$4 sm:$0xff]   ;;  %v1938_v9 = vld [vmem:[#allocation2 + $0x50] ss:$8 sps:$4 sm:$0xff]   ;;  %v1939_v10 = vld [vmem:[#allocation2 + $0x154] ss:$8 sps:$4 sm:$0xff]  }
  0x2d   :  { %735 = vmatprep.subr.bf16.mxu1 %v1933_v6  ;;  %v1942_v11 = vld [vmem:[#allocation2 + $0x44] ss:$8 sps:$4 sm:$0xff]   ;;  %v1941_v12 = vld [vmem:[#allocation2 + $0x150] ss:$8 sps:$4 sm:$0xff]   ;;  %v1944_v14 = vld [vmem:[#allocation2 + $0x40] ss:$8 sps:$4 sm:$0xff]  }
  0x2e   :  { %v1945_v13 = vld [vmem:[#allocation2 + $0x144] ss:$8 sps:$4 sm:$0xff]   ;;  %v1948_v15 = vld [vmem:[#allocation2 + $0x34] ss:$8 sps:$4 sm:$0xff]   ;;  %v1947_v16 = vld [vmem:[#allocation2 + $0x140] ss:$8 sps:$4 sm:$0xff]  }
  0x2f   :  { %695 = vmatpush1.bf16.msra.mxu0 %v1932_v5  ;;  %v1951_v17 = vld [vmem:[#allocation2 + $0x134] ss:$8 sps:$4 sm:$0xff]   ;;  %v1950_v18 = vld [vmem:[#allocation2 + $0x30] ss:$8 sps:$4 sm:$0xff]   ;;  %v1954_v19 = vld [vmem:[#allocation2 + $0x24] ss:$8 sps:$4 sm:$0xff]  }
  0x30   :  { %696 = vmatprep.subr.bf16.mxu0 %v1936_v8  ;;  %736 = vmatpush1.bf16.msra.mxu1 %v1935_v7  ;;  %v1953_v20 = vld [vmem:[#allocation2 + $0x130] ss:$8 sps:$4 sm:$0xff]   ;;  %v1957_v21 = vld [vmem:[#allocation2 + $0x124] ss:$8 sps:$4 sm:$0xff]   ;;  %v1956_v22 = vld [vmem:[#allocation2 + $0x20] ss:$8 sps:$4 sm:$0xff]  }
  0x31   :  { %737 = vmatprep.subr.bf16.mxu1 %v1939_v10  ;;  %v1960_v23 = vld [vmem:[#allocation2 + $0x14] ss:$8 sps:$4 sm:$0xff]   ;;  %v1959_v24 = vld [vmem:[#allocation2 + $0x120] ss:$8 sps:$4 sm:$0xff]   ;;  %v1962_v26 = vld [vmem:[#allocation2 + $0x10] ss:$8 sps:$4 sm:$0xff]  }
  0x32   :  { %v1963_v25 = vld [vmem:[#allocation2 + $0x114] ss:$8 sps:$4 sm:$0xff]   ;;  %v1966_v27 = vld [vmem:[#allocation2 + $0x4] ss:$8 sps:$4 sm:$0xff]   ;;  %v1965_v28 = vld [vmem:[#allocation2 + $0x110] ss:$8 sps:$4 sm:$0xff]  }
  0x33   :  { %697 = vmatpush1.bf16.msra.mxu0 %v1938_v9  ;;  %v1969_v29 = vld [vmem:[#allocation2 + $0x104] ss:$8 sps:$4 sm:$0xff]   ;;  %v1968_v30 = vld [vmem:[#allocation2] ss:$8 sps:$4 sm:$0xff]   ;;  %v1972_v31 = vld [vmem:[#allocation2 + $0xf4] ss:$8 sps:$4 sm:$0xff]  }
  0x34   :  { %698 = vmatprep.subr.bf16.mxu0 %v1942_v11  ;;  %738 = vmatpush1.bf16.msra.mxu1 %v1941_v12  ;;  %v1971_v32 = vld [vmem:[#allocation2 + $0x100] ss:$8 sps:$4 sm:$0xff]   ;;  %v1975_v33 = vld [vmem:[#allocation2 + $0x1f4] ss:$8 sps:$4 sm:$0xff]   ;;  %v1974_v34 = vld [vmem:[#allocation2 + $0xf0] ss:$8 sps:$4 sm:$0xff]  }
  0x35   :  { %739 = vmatprep.subr.bf16.mxu1 %v1945_v13  ;;  %v2292_v35 = vmov 1983009808   ;;  %v1978_v38 = vld [vmem:[#allocation2 + $0xe4] ss:$8 sps:$4 sm:$0xff]   ;;  %v1977_v39 = vld [vmem:[#allocation2 + $0x1f0] ss:$8 sps:$4 sm:$0xff]  }
  0x36   :  { %v69_v36 = vunpack.c.l.s4 %v2292_v35  ;;  %v1981_v40 = vld [vmem:[#allocation2 + $0x1e4] ss:$8 sps:$4 sm:$0xff]   ;;  %v1980_v41 = vld [vmem:[#allocation2 + $0xe0] ss:$8 sps:$4 sm:$0xff]   ;;  %v2333_v43 = vshrl.u32 %v71_v37, 7  ;;  %s2293_s20 = smov [#allocation8]  }
  0x37   :  { %699 = vmatpush1.bf16.msra.mxu0 %v1944_v14  ;;  %v1984_v44 = vld [vmem:[#allocation2 + $0xd4] ss:$8 sps:$4 sm:$0xff]   ;;  %v1983_v45 = vld [vmem:[#allocation2 + $0x1e0] ss:$8 sps:$4 sm:$0xff]   ;;  %v1986_v47 = vld [vmem:[#allocation2 + $0xd0] ss:$8 sps:$4 sm:$0xff]  }
  0x38   :  { %700 = vmatprep.subr.bf16.mxu0 %v1948_v15  ;;  %740 = vmatpush1.bf16.msra.mxu1 %v1947_v16  ;;  %v70_v42 = vunpack.c.0.s8 %v69_v36  ;;  %v1987_v46 = vld [vmem:[#allocation2 + $0x1d4] ss:$8 sps:$4 sm:$0xff]   ;;  %v1990_v49 = vld [vmem:[#allocation2 + $0xc4] ss:$8 sps:$4 sm:$0xff]   ;;  %v1989_v50 = vld [vmem:[#allocation2 + $0x1d0] ss:$8 sps:$4 sm:$0xff]  }
  0x39   :  { %741 = vmatprep.subr.bf16.mxu1 %v1951_v17  ;;  %v1993_v51 = vld [vmem:[#allocation2 + $0x1c4] ss:$8 sps:$4 sm:$0xff]   ;;  %v1992_v53 = vld [vmem:[#allocation2 + $0xc0] ss:$8 sps:$4 sm:$0xff]   ;;  %v1996_v56 = vld [vmem:[#allocation2 + $0xb4] ss:$8 sps:$4 sm:$0xff]  }
  0x3a   :  { %v73_v48 = vsub.s32 %v70_v42, %v2333_v43  ;;  %v63_v52 = vld [vmem:[%s2364_s0] sm:$0xff]  ;;  %v1999_v60 = vld [vmem:[#allocation2 + $0x1b4] ss:$8 sps:$4 sm:$0xff]   ;;  %v1998_v61 = vld [vmem:[#allocation2 + $0xb0] ss:$8 sps:$4 sm:$0xff]   ;;  %s1665_s21 = sshll.u32 %s2293_s20, 4  ;;  %s1666_s21 = int_to_ptr.vmem [resolvable:$true] %s1665_s21 }
  0x3b   :  { %701 = vmatpush1.bf16.msra.mxu0 %v1950_v18  ;;  %v67_v55 = vcombine.high %v63_v52, %v63_v52  ;;  %v1995_v57 = vld [vmem:[#allocation2 + $0x1c0] ss:$8 sps:$4 sm:$0xff]   ;;  %v2002_v0 = vld [vmem:[#allocation2 + $0xa4] ss:$8 sps:$4 sm:$0xff]   ;;  %v2001_v1 = vld [vmem:[#allocation2 + $0x1b0] ss:$8 sps:$4 sm:$0xff]   ;;  %p2262_p2 = scmp.lt.s32.totalorder %s1666_s21, %s1666_s21 }
  0x3c   :  { %702 = vmatprep.subr.bf16.mxu0 %v1954_v19  ;;  %742 = vmatpush1.bf16.msra.mxu1 %v1953_v20  ;;  %v74_v54 = vrot.slane %v63_v52, %v73_v48  ;;  %v2005_v3 = vld [vmem:[#allocation2 + $0x1a4] ss:$8 sps:$4 sm:$0xff]   ;;  %v2004_v4 = vld [vmem:[#allocation2 + $0xa0] ss:$8 sps:$4 sm:$0xff]   ;;  %v2008_v5 = vld [vmem:[#allocation2 + $0x94] ss:$8 sps:$4 sm:$0xff]  }
  0x3d   :  { %743 = vmatprep.subr.bf16.mxu1 %v1957_v21  ;;  %v81_v59 = vrot.slane %v67_v55, %v73_v48  ;;  %v2007_v6 = vld [vmem:[#allocation2 + $0x1a0] ss:$8 sps:$4 sm:$0xff]   ;;  %v2011_v7 = vld [vmem:[#allocation2 + $0x194] ss:$8 sps:$4 sm:$0xff]   ;;  %v2010_v8 = vld [vmem:[#allocation2 + $0x90] ss:$8 sps:$4 sm:$0xff]  }
  0x3e   :  { %v82_v58 = vcombine.high %v74_v54, %v74_v54  ;;  %v2014_v9 = vld [vmem:[#allocation2 + $0x84] ss:$8 sps:$4 sm:$0xff]   ;;  %v2013_v10 = vld [vmem:[#allocation2 + $0x190] ss:$8 sps:$4 sm:$0xff]   ;;  %v2016_v12 = vld [vmem:[#allocation2 + $0x80] ss:$8 sps:$4 sm:$0xff]   ;;  %v98_v15 = vpack.c.bf16 %v74_v54, %v74_v54 }
  0x3f   :  { %703 = vmatpush1.bf16.msra.mxu0 %v1956_v22  ;;  %v83_v63 = vcombine.high %v81_v59, %v81_v59  ;;  %v2017_v11 = vld [vmem:[#allocation2 + $0x184] ss:$8 sps:$4 sm:$0xff]   ;;  %v2022_v13 = vld [vmem:[#allocation2 + $0x274] ss:$8 sps:$4 sm:$0xff]   ;;  %v2019_v14 = vld [vmem:[#allocation2 + $0x180] ss:$8 sps:$4 sm:$0xff]   ;;  %v100_v17 = vpack.c.bf16 %v81_v59, %v81_v59 }
  0x40   :  { %704 = vmatprep.subr.bf16.mxu0 %v1960_v23  ;;  %744 = vmatpush1.bf16.msra.mxu1 %v1959_v24  ;;  %v99_v62 = vpack.c.bf16 %v82_v58, %v82_v58  ;;  %v2020_v16 = vld [vmem:[#allocation2 + $0x270] ss:$8 sps:$4 sm:$0xff]   ;;  %v2026_v18 = vld [vmem:[#allocation2 + $0x264] ss:$8 sps:$4 sm:$0xff]   ;;  %v2024_v20 = vld [vmem:[#allocation2 + $0x260] ss:$8 sps:$4 sm:$0xff]  }
  0x41   :  { %745 = vmatprep.subr.bf16.mxu1 %v1963_v25  ;;  %v101_v2 = vpack.c.bf16 %v83_v63, %v83_v63  ;;  %v2342_v19 = vld.sshfl [vmem:[%s2364_s0 + $0x8] sm:$0x33 pattern:$0x76325410]  ;;  %v2029_v22 = vld [vmem:[#allocation2 + $0x254] ss:$8 sps:$4 sm:$0xff]  }
  0x42   :  { %724 = vmatprep.mubr.bf16.mxu0 %v99_v62  ;;  %v91_v21 = vcombine.high %v2342_v19, %v2342_v19  ;;  %v2027_v24 = vld [vmem:[#allocation2 + $0x250] ss:$8 sps:$4 sm:$0xff]   ;;  %v2032_v25 = vld [vmem:[#allocation2 + $0x244] ss:$8 sps:$4 sm:$0xff]   ;;  %v2047_v35 = vld [vmem:[#allocation2 + $0x2f4] ss:$8 sps:$4 sm:$0xff]   ;;  %v102_v52 = vpack.c.bf16 %v2342_v19, %v2342_v19 }
  0x43   :  { %705 = vmatpush1.bf16.msra.mxu0 %v1962_v26  ;;  %765 = vmatprep.mubr.bf16.mxu1 %v101_v2  ;;  %v2030_v26 = vld [vmem:[#allocation2 + $0x240] ss:$8 sps:$4 sm:$0xff]   ;;  %v2045_v36 = vld [vmem:[#allocation2 + $0x2f0] ss:$8 sps:$4 sm:$0xff]   ;;  %v2050_v37 = vld [vmem:[#allocation2 + $0x2e4] ss:$8 sps:$4 sm:$0xff]  }
  0x44   :  { %706 = vmatprep.subr.bf16.mxu0 %v1966_v27  ;;  %746 = vmatpush1.bf16.msra.mxu1 %v1965_v28  ;;  %v103_v23 = vpack.c.bf16 %v91_v21, %v91_v21  ;;  %v2035_v27 = vld [vmem:[#allocation2 + $0x234] ss:$8 sps:$4 sm:$0xff]   ;;  %v2033_v28 = vld [vmem:[#allocation2 + $0x230] ss:$8 sps:$4 sm:$0xff]   ;;  %v2054_v42 = vld [vmem:[#allocation2 + $0x2c0] ss:$8 sps:$4 sm:$0xff]  }
  0x45   :  { %747 = vmatprep.subr.bf16.mxu1 %v1969_v29  ;;  %v2038_v29 = vld [vmem:[#allocation2 + $0x224] ss:$8 sps:$4 sm:$0xff]   ;;  %v2065_v48 = vld [vmem:[#allocation2 + $0x294] ss:$8 sps:$4 sm:$0xff]   ;;  %v2072_v55 = vld [vmem:[#allocation5 + $0xe8] ss:$16 sps:$4 sm:$0xff]  }
  0x46   :  { %v2071_v54 = vld [vmem:[#allocation5 + $0xe4] ss:$16 sps:$4 sm:$0xff]   ;;  %v2080_v58 = vld [vmem:[#allocation5 + $0xcc] ss:$16 sps:$4 sm:$0xff]   ;;  %v2075_v59 = vld [vmem:[#allocation5 + $0xc0] ss:$16 sps:$4 sm:$0xff]  }
  0x47   :  { %707 = vmatpush1.bf16.msra.mxu0 %v1968_v30  ;;  %v2036_v30 = vld [vmem:[#allocation2 + $0x220] ss:$8 sps:$4 sm:$0xff]   ;;  %v2086_v62 = vld [vmem:[#allocation5 + $0xac] ss:$16 sps:$4 sm:$0xff]   ;;  %v2119_v21 = vld [vmem:[#allocation5 + $0x1e4] ss:$16 sps:$4 sm:$0xff]  }
  0x48   :  { %708 = vmatprep.subr.bf16.mxu0 %v1972_v31  ;;  %748 = vmatpush1.bf16.msra.mxu1 %v1971_v32  ;;  %v2041_v31 = vld [vmem:[#allocation2 + $0x214] ss:$8 sps:$4 sm:$0xff]   ;;  %v2039_v32 = vld [vmem:[#allocation2 + $0x210] ss:$8 sps:$4 sm:$0xff]   ;;  %s2257_s22 = scalar_lea.vmem %s1666_s21, 32 }
  0x49   :  { %749 = vmatprep.subr.bf16.mxu1 %v1975_v33  ;;  %v2044_v33 = vld [vmem:[#allocation2 + $0x204] ss:$8 sps:$4 sm:$0xff]   ;;  %v2081_v63 = vld [vmem:[#allocation5 + $0xa0] ss:$16 sps:$4 sm:$0xff]   ;;  %p2258_p1 = scmp.ne.s32.totalorder %s1666_s21, %s2257_s22  ;;  %p2263_p3 = scmp.lt.s32.totalorder %s2257_s22, %s2257_s22 }
  0x4a   :  { %v2092_v2 = vld [vmem:[#allocation5 + $0x8c] ss:$16 sps:$4 sm:$0xff]   ;;  %v2111_v19 = vld [vmem:[#allocation5] ss:$16 sps:$4 sm:$0xff]  }
  0x4b   :  { %709 = vmatpush2.bf16.msra.mxu0 %v1974_v34  ;;  %v2042_v34 = vld [vmem:[#allocation2 + $0x200] ss:$8 sps:$4 sm:$0xff]   ;;  %p2264_p4 = por %p2263_p3, %p2262_p2 }
  0x4c   :  { %710 = vmatprep.subr.bf16.mxu0 %v1978_v38  ;;  %750 = vmatpush2.bf16.msra.mxu1 %v1977_v39  ;;  %v2048_v38 = vld [vmem:[#allocation2 + $0x2e0] ss:$8 sps:$4 sm:$0xff]   ;;  %v2053_v39 = vld [vmem:[#allocation2 + $0x2d4] ss:$8 sps:$4 sm:$0xff]  }
  0x4d   :  { %751 = vmatprep.subr.bf16.mxu1 %v1981_v40  ;;  %v2051_v40 = vld [vmem:[#allocation2 + $0x2d0] ss:$8 sps:$4 sm:$0xff]   ;;  %p2265_p5 = pnand %p2264_p4, %p2258_p1 }
  0x4f   :  { %711 = vmatpush2.bf16.msra.mxu0 %v1980_v41  ;;  %v2056_v41 = vld [vmem:[#allocation2 + $0x2c4] ss:$8 sps:$4 sm:$0xff]  }
  0x50   :  { %712 = vmatprep.subr.bf16.mxu0 %v1984_v44  ;;  %752 = vmatpush2.bf16.msra.mxu1 %v1983_v45  ;;  %v2059_v44 = vld [vmem:[#allocation2 + $0x2b4] ss:$8 sps:$4 sm:$0xff]   ;;  %v2057_v45 = vld [vmem:[#allocation2 + $0x2b0] ss:$8 sps:$4 sm:$0xff]  }
  0x51   :  { %753 = vmatprep.subr.bf16.mxu1 %v1987_v46  ;;  %v2062_v46 = vld [vmem:[#allocation2 + $0x2a4] ss:$8 sps:$4 sm:$0xff]  }
  0x53   :  { %713 = vmatpush2.bf16.msra.mxu0 %v1986_v47  ;;  %v2060_v47 = vld [vmem:[#allocation2 + $0x2a0] ss:$8 sps:$4 sm:$0xff]  }
  0x54   :  { %714 = vmatprep.subr.bf16.mxu0 %v1990_v49  ;;  %754 = vmatpush2.bf16.msra.mxu1 %v1989_v50  ;;  %v2063_v49 = vld [vmem:[#allocation2 + $0x290] ss:$8 sps:$4 sm:$0xff]   ;;  %v2068_v50 = vld [vmem:[#allocation2 + $0x284] ss:$8 sps:$4 sm:$0xff]  }
  0x55   :  { %755 = vmatprep.subr.bf16.mxu1 %v1993_v51  ;;  %v2066_v51 = vld [vmem:[#allocation2 + $0x280] ss:$8 sps:$4 sm:$0xff]  }
  0x57   :  { %715 = vmatpush2.bf16.msra.mxu0 %v1992_v53  ;;  %v2069_v53 = vld [vmem:[#allocation5 + $0xe0] ss:$16 sps:$4 sm:$0xff]  }
  0x58   :  { %716 = vmatprep.subr.bf16.mxu0 %v1996_v56  ;;  %756 = vmatpush2.bf16.msra.mxu1 %v1995_v57  ;;  %v2074_v56 = vld [vmem:[#allocation5 + $0xec] ss:$16 sps:$4 sm:$0xff]   ;;  %v2077_v57 = vld [vmem:[#allocation5 + $0xc4] ss:$16 sps:$4 sm:$0xff]  }
  0x59   :  { %757 = vmatprep.subr.bf16.mxu1 %v1999_v60  ;;  %v2078_v60 = vld [vmem:[#allocation5 + $0xc8] ss:$16 sps:$4 sm:$0xff]  }
  0x5b   :  { %717 = vmatpush2.bf16.msra.mxu0 %v1998_v61  ;;  %v2083_v61 = vld [vmem:[#allocation5 + $0xa4] ss:$16 sps:$4 sm:$0xff]  }
  0x5c   :  { %718 = vmatprep.subr.bf16.mxu0 %v2002_v0  ;;  %758 = vmatpush2.bf16.msra.mxu1 %v2001_v1  ;;  %v2084_v0 = vld [vmem:[#allocation5 + $0xa8] ss:$16 sps:$4 sm:$0xff]   ;;  %v2089_v1 = vld [vmem:[#allocation5 + $0x84] ss:$16 sps:$4 sm:$0xff]  }
  0x5d   :  { %759 = vmatprep.subr.bf16.mxu1 %v2005_v3  ;;  %v2087_v3 = vld [vmem:[#allocation5 + $0x80] ss:$16 sps:$4 sm:$0xff]  }
  0x5f   :  { %719 = vmatpush2.bf16.msra.mxu0 %v2004_v4  ;;  %v2090_v4 = vld [vmem:[#allocation5 + $0x88] ss:$16 sps:$4 sm:$0xff]  }
  0x60   :  { %720 = vmatprep.subr.bf16.mxu0 %v2008_v5  ;;  %760 = vmatpush2.bf16.msra.mxu1 %v2007_v6  ;;  %v2095_v5 = vld [vmem:[#allocation5 + $0x64] ss:$16 sps:$4 sm:$0xff]   ;;  %v2098_v6 = vld [vmem:[#allocation5 + $0x6c] ss:$16 sps:$4 sm:$0xff]  }
  0x61   :  { %761 = vmatprep.subr.bf16.mxu1 %v2011_v7  ;;  %v2093_v7 = vld [vmem:[#allocation5 + $0x60] ss:$16 sps:$4 sm:$0xff]  }
  0x63   :  { %721 = vmatpush2.bf16.msra.mxu0 %v2010_v8  ;;  %v2096_v8 = vld [vmem:[#allocation5 + $0x68] ss:$16 sps:$4 sm:$0xff]  }
  0x64   :  { %722 = vmatprep.subr.bf16.mxu0 %v2014_v9  ;;  %762 = vmatpush2.bf16.msra.mxu1 %v2013_v10  ;;  %v2101_v9 = vld [vmem:[#allocation5 + $0x44] ss:$16 sps:$4 sm:$0xff]   ;;  %v2104_v10 = vld [vmem:[#allocation5 + $0x4c] ss:$16 sps:$4 sm:$0xff]  }
  0x65   :  { %763 = vmatprep.subr.bf16.mxu1 %v2017_v11  ;;  %v2099_v11 = vld [vmem:[#allocation5 + $0x40] ss:$16 sps:$4 sm:$0xff]  }
  0x67   :  { %723 = vmatpush2.bf16.msra.mxu0 %v2016_v12  ;;  %v2102_v12 = vld [vmem:[#allocation5 + $0x48] ss:$16 sps:$4 sm:$0xff]  }
  0x68   :  { %774 = vmatprep.subr.bf16.mxu0 %v2022_v13  ;;  %764 = vmatpush2.bf16.msra.mxu1 %v2019_v14  ;;  %v2107_v13 = vld [vmem:[#allocation5 + $0x24] ss:$16 sps:$4 sm:$0xff]   ;;  %v2110_v14 = vld [vmem:[#allocation5 + $0x2c] ss:$16 sps:$4 sm:$0xff]  }
  0x69   :  { %1225 = vmatprep.subr.bf16.mxu1 %v2071_v54  ;;  %v2165_v54 = vld [vmem:[#allocation7 + $0x78] sm:$0xff]  }
  0x6a   :  { %725 = vmatmul.mubr.bf16.vlgmr.msra.gmra.mxu0 %v98_v15  ;;  %v2105_v15 = vld [vmem:[#allocation5 + $0x20] ss:$16 sps:$4 sm:$0xff]  }
  0x6b   :  { %775 = vmatpush1.bf16.msra.mxu0 %v2020_v16  ;;  %766 = vmatmul.mubr.bf16.vlgmr.msra.gmra.mxu1 %v100_v17  ;;  %v2108_v16 = vld [vmem:[#allocation5 + $0x28] ss:$16 sps:$4 sm:$0xff]   ;;  %v2113_v17 = vld [vmem:[#allocation5 + $0x4] ss:$16 sps:$4 sm:$0xff]  }
  0x6c   :  { %776 = vmatprep.subr.bf16.mxu0 %v2026_v18  ;;  %806 = vmatprep.mubr.bf16.mxu0 %v103_v23  ;;  %v2116_v18 = vld [vmem:[#allocation5 + $0xc] ss:$16 sps:$4 sm:$0xff]   ;;  %v2117_v23 = vld [vmem:[#allocation5 + $0x1e0] ss:$16 sps:$4 sm:$0xff]  }
  0x6d   :  { %1226 = vmatpush1.bf16.msra.mxu1 %v2069_v53  ;;  %v2162_v53 = vld [vmem:[#allocation5 + $0x108] ss:$16 sps:$4 sm:$0xff]  }
  0x6e   :  { %1227 = vmatprep.subr.bf16.mxu1 %v2077_v57 }
  0x6f   :  { %777 = vmatpush1.bf16.msra.mxu0 %v2024_v20  ;;  %v2114_v20 = vld [vmem:[#allocation5 + $0x8] ss:$16 sps:$4 sm:$0xff]  }
  0x70   :  { %778 = vmatprep.subr.bf16.mxu0 %v2029_v22  ;;  %v2122_v22 = vld [vmem:[#allocation5 + $0x1ec] ss:$16 sps:$4 sm:$0xff]  }
  0x71   :  { %1228 = vmatpush1.bf16.msra.mxu1 %v2075_v59 }
  0x72   :  { %1229 = vmatprep.subr.bf16.mxu1 %v2083_v61 }
  0x73   :  { %779 = vmatpush1.bf16.msra.mxu0 %v2027_v24  ;;  %v2120_v24 = vld [vmem:[#allocation5 + $0x1e8] ss:$16 sps:$4 sm:$0xff]  }
  0x74   :  { %780 = vmatprep.subr.bf16.mxu0 %v2032_v25  ;;  %v2125_v25 = vld [vmem:[#allocation5 + $0x1c4] ss:$16 sps:$4 sm:$0xff]  }
  0x75   :  { %1230 = vmatpush1.bf16.msra.mxu1 %v2081_v63  ;;  %v204_v63 = vsub.s32 0, %v2333_v43 }
  0x76   :  { %1231 = vmatprep.subr.bf16.mxu1 %v2089_v1  ;;  %v208_v1 = vsub.s32 1, %v2333_v43 }
  0x77   :  { %781 = vmatpush1.bf16.msra.mxu0 %v2030_v26  ;;  %v2128_v26 = vld [vmem:[#allocation5 + $0x1cc] ss:$16 sps:$4 sm:$0xff]  }
  0x78   :  { %782 = vmatprep.subr.bf16.mxu0 %v2035_v27  ;;  %v2123_v27 = vld [vmem:[#allocation5 + $0x1c0] ss:$16 sps:$4 sm:$0xff]  }
  0x79   :  { %1232 = vmatpush1.bf16.msra.mxu1 %v2087_v3 }
  0x7a   :  { %1233 = vmatprep.subr.bf16.mxu1 %v2095_v5 }
  0x7b   :  { %783 = vmatpush1.bf16.msra.mxu0 %v2033_v28  ;;  %v2126_v28 = vld [vmem:[#allocation5 + $0x1c8] ss:$16 sps:$4 sm:$0xff]  }
  0x7c   :  { %784 = vmatprep.subr.bf16.mxu0 %v2038_v29  ;;  %v2131_v29 = vld [vmem:[#allocation5 + $0x1a4] ss:$16 sps:$4 sm:$0xff]  }
  0x7d   :  { %1234 = vmatpush1.bf16.msra.mxu1 %v2093_v7 }
  0x7e   :  { %1235 = vmatprep.subr.bf16.mxu1 %v2101_v9 }
  0x7f   :  { %785 = vmatpush1.bf16.msra.mxu0 %v2036_v30  ;;  %v2134_v30 = vld [vmem:[#allocation5 + $0x1ac] ss:$16 sps:$4 sm:$0xff]  }
  0x80   :  { %786 = vmatprep.subr.bf16.mxu0 %v2041_v31  ;;  %v2129_v31 = vld [vmem:[#allocation5 + $0x1a0] ss:$16 sps:$4 sm:$0xff]  }
  0x81   :  { %1236 = vmatpush1.bf16.msra.mxu1 %v2099_v11 }
  0x82   :  { %1237 = vmatprep.subr.bf16.mxu1 %v2107_v13 }
  0x83   :  { %787 = vmatpush1.bf16.msra.mxu0 %v2039_v32  ;;  %v2132_v32 = vld [vmem:[#allocation5 + $0x1a8] ss:$16 sps:$4 sm:$0xff]  }
  0x84   :  { %788 = vmatprep.subr.bf16.mxu0 %v2044_v33  ;;  %v2137_v33 = vld [vmem:[#allocation5 + $0x184] ss:$16 sps:$4 sm:$0xff]  }
  0x85   :  { %1238 = vmatpush1.bf16.msra.mxu1 %v2105_v15 }
  0x86   :  { %1239 = vmatprep.subr.bf16.mxu1 %v2113_v17  ;;  %v2166_v17 = vld [vmem:[#allocation7 + $0x38] sm:$0xff]  }
  0x87   :  { %789 = vmatpush1.bf16.msra.mxu0 %v2042_v34  ;;  %v2140_v34 = vld [vmem:[#allocation5 + $0x18c] ss:$16 sps:$4 sm:$0xff]  }
  0x88   :  { %790 = vmatprep.subr.bf16.mxu0 %v2047_v35  ;;  %v2135_v35 = vld [vmem:[#allocation5 + $0x180] ss:$16 sps:$4 sm:$0xff]  }
  0x89   :  { %1240 = vmatpush1.bf16.msra.mxu1 %v2111_v19  ;;  %v2167_v19 = vld [vmem:[#allocation7 + $0x70] sm:$0xff]  }
  0x8a   :  { %1241 = vmatprep.subr.bf16.mxu1 %v2119_v21  ;;  %v2169_v21 = vld [vmem:[#allocation7 + $0x68] sm:$0xff]  }
  0x8b   :  { %791 = vmatpush2.bf16.msra.mxu0 %v2045_v36  ;;  %v2138_v36 = vld [vmem:[#allocation5 + $0x188] ss:$16 sps:$4 sm:$0xff]  }
  0x8c   :  { %792 = vmatprep.subr.bf16.mxu0 %v2050_v37  ;;  %v2143_v37 = vld [vmem:[#allocation5 + $0x164] ss:$16 sps:$4 sm:$0xff]  }
  0x8d   :  { %1242 = vmatpush2.bf16.msra.mxu1 %v2117_v23  ;;  %v2171_v23 = vld [vmem:[#allocation7 + $0x60] sm:$0xff]  }
  0x8e   :  { %1243 = vmatprep.subr.bf16.mxu1 %v2125_v25  ;;  %v2173_v25 = vld [vmem:[#allocation7 + $0x58] sm:$0xff]  }
  0x8f   :  { %793 = vmatpush2.bf16.msra.mxu0 %v2048_v38  ;;  %v2146_v38 = vld [vmem:[#allocation5 + $0x16c] ss:$16 sps:$4 sm:$0xff]  }
  0x90   :  { %794 = vmatprep.subr.bf16.mxu0 %v2053_v39  ;;  %v2141_v39 = vld [vmem:[#allocation5 + $0x160] ss:$16 sps:$4 sm:$0xff]  }
  0x91   :  { %1244 = vmatpush2.bf16.msra.mxu1 %v2123_v27  ;;  %v2175_v27 = vld [vmem:[#allocation7 + $0x50] sm:$0xff]  }
  0x92   :  { %1245 = vmatprep.subr.bf16.mxu1 %v2131_v29  ;;  %v2177_v29 = vld [vmem:[#allocation7 + $0x48] sm:$0xff]  }
  0x93   :  { %795 = vmatpush2.bf16.msra.mxu0 %v2051_v40  ;;  %v2144_v40 = vld [vmem:[#allocation5 + $0x168] ss:$16 sps:$4 sm:$0xff]  }
  0x94   :  { %796 = vmatprep.subr.bf16.mxu0 %v2056_v41  ;;  %v2149_v41 = vld [vmem:[#allocation5 + $0x144] ss:$16 sps:$4 sm:$0xff]  }
  0x95   :  { %1246 = vmatpush2.bf16.msra.mxu1 %v2129_v31  ;;  %v2179_v31 = vld [vmem:[#allocation7 + $0x40] sm:$0xff]  }
  0x96   :  { %1247 = vmatprep.subr.bf16.mxu1 %v2137_v33  ;;  %v2181_v33 = vld [vmem:[#allocation7 + $0xf8] sm:$0xff]  }
  0x97   :  { %797 = vmatpush2.bf16.msra.mxu0 %v2054_v42  ;;  %v2152_v42 = vld [vmem:[#allocation5 + $0x14c] ss:$16 sps:$4 sm:$0xff]  }
  0x98   :  { %798 = vmatprep.subr.bf16.mxu0 %v2059_v44  ;;  %v2147_v44 = vld [vmem:[#allocation5 + $0x140] ss:$16 sps:$4 sm:$0xff]  }
  0x99   :  { %1248 = vmatpush2.bf16.msra.mxu1 %v2135_v35  ;;  %v899_v35 = vsub.s32 3, %v2333_v43 }
  0x9a   :  { %1249 = vmatprep.subr.bf16.mxu1 %v2143_v37 }
  0x9b   :  { %799 = vmatpush2.bf16.msra.mxu0 %v2057_v45  ;;  %v2150_v45 = vld [vmem:[#allocation5 + $0x148] ss:$16 sps:$4 sm:$0xff]  }
  0x9c   :  { %800 = vmatprep.subr.bf16.mxu0 %v2062_v46  ;;  %v2155_v46 = vld [vmem:[#allocation5 + $0x124] ss:$16 sps:$4 sm:$0xff]  }
  0x9d   :  { %1250 = vmatpush2.bf16.msra.mxu1 %v2141_v39 }
  0x9e   :  { %1251 = vmatprep.subr.bf16.mxu1 %v2149_v41 }
  0x9f   :  { %801 = vmatpush2.bf16.msra.mxu0 %v2060_v47  ;;  %v2158_v47 = vld [vmem:[#allocation5 + $0x12c] ss:$16 sps:$4 sm:$0xff]  }
  0xa0   :  { %802 = vmatprep.subr.bf16.mxu0 %v2065_v48  ;;  %v2153_v48 = vld [vmem:[#allocation5 + $0x120] ss:$16 sps:$4 sm:$0xff]  }
  0xa1   :  { %1252 = vmatpush2.bf16.msra.mxu1 %v2147_v44 }
  0xa2   :  { %1253 = vmatprep.subr.bf16.mxu1 %v2155_v46 }
  0xa3   :  { %803 = vmatpush2.bf16.msra.mxu0 %v2063_v49  ;;  %v2156_v49 = vld [vmem:[#allocation5 + $0x128] ss:$16 sps:$4 sm:$0xff]  }
  0xa4   :  { %804 = vmatprep.subr.bf16.mxu0 %v2068_v50  ;;  %v2161_v50 = vld [vmem:[#allocation5 + $0x104] ss:$16 sps:$4 sm:$0xff]  }
  0xa5   :  { %1254 = vmatpush2.bf16.msra.mxu1 %v2153_v48 }
  0xa6   :  { %1255 = vmatprep.subr.bf16.mxu1 %v2161_v50 }
  0xa7   :  { %805 = vmatpush2.bf16.msra.mxu0 %v2066_v51  ;;  %v2164_v51 = vld [vmem:[#allocation5 + $0x10c] ss:$16 sps:$4 sm:$0xff]  }
  0xa8   :  { %1266 = vmatprep.subr.bf16.mxu0 %v2074_v56 }
  0xaa   :  { %807 = vmatmul.mubr.bf16.vlgmr.msra.gmra.mxu0 %v102_v52  ;;  %v2159_v52 = vld [vmem:[#allocation5 + $0x100] ss:$16 sps:$4 sm:$0xff]  }
  0xab   :  { %1267 = vmatpush1.bf16.msra.mxu0 %v2072_v55  ;;  %1256 = vmatpush2.bf16.msra.mxu1 %v2159_v52 }
  0xac   :  { %1268 = vmatprep.subr.bf16.mxu0 %v2080_v58  ;;  %1869 = vmatprep.subr.bf16.mxu1 %v2165_v54 }
  0xaf   :  { %1269 = vmatpush1.bf16.msra.mxu0 %v2078_v60 }
  0xb0   :  { %1270 = vmatprep.subr.bf16.mxu0 %v2086_v62 }
  0xb3   :  { %1271 = vmatpush1.bf16.msra.mxu0 %v2084_v0  ;;  %v200_v0 = vld [vmem:[%s2368_s4] sm:$0x3] }
  0xb4   :  { %1272 = vmatprep.subr.bf16.mxu0 %v2092_v2  ;;  %v205_v2 = vrot.slane %v200_v0, %v204_v63  ;;  %v209_v3 = vrot.slane %v200_v0, %v208_v1  ;;  %v2189_v0 = vld [vmem:[#allocation7 + $0xd8] sm:$0xff]  }
  0xb7   :  { %1273 = vmatpush1.bf16.msra.mxu0 %v2090_v4 }
  0xb8   :  { %1274 = vmatprep.subr.bf16.mxu0 %v2098_v6 }
  0xbb   :  { %1275 = vmatpush1.bf16.msra.mxu0 %v2096_v8 }
  0xbc   :  { %1276 = vmatprep.subr.bf16.mxu0 %v2104_v10 }
  0xbf   :  { %1277 = vmatpush1.bf16.msra.mxu0 %v2102_v12 }
  0xc0   :  { %1278 = vmatprep.subr.bf16.mxu0 %v2110_v14 }
  0xc3   :  { %1279 = vmatpush1.bf16.msra.mxu0 %v2108_v16 }
  0xc4   :  { %1280 = vmatprep.subr.bf16.mxu0 %v2116_v18 }
  0xc7   :  { %1281 = vmatpush1.bf16.msra.mxu0 %v2114_v20  ;;  %v2168_v20 = vld [vmem:[#allocation7 + $0x30] sm:$0xff]  }
  0xc8   :  { %1282 = vmatprep.subr.bf16.mxu0 %v2122_v22  ;;  %v2170_v22 = vld [vmem:[#allocation7 + $0x28] sm:$0xff]  }
  0xcb   :  { %1283 = vmatpush2.bf16.msra.mxu0 %v2120_v24  ;;  %v2172_v24 = vld [vmem:[#allocation7 + $0x20] sm:$0xff]  }
  0xcc   :  { %1284 = vmatprep.subr.bf16.mxu0 %v2128_v26  ;;  %v2174_v26 = vld [vmem:[#allocation7 + $0x18] sm:$0xff]  }
  0xcf   :  { %1285 = vmatpush2.bf16.msra.mxu0 %v2126_v28  ;;  %v2176_v28 = vld [vmem:[#allocation7 + $0x10] sm:$0xff]  }
  0xd0   :  { %1286 = vmatprep.subr.bf16.mxu0 %v2134_v30  ;;  %v2178_v30 = vld [vmem:[#allocation7 + $0x8] sm:$0xff]  }
  0xd3   :  { %1287 = vmatpush2.bf16.msra.mxu0 %v2132_v32  ;;  %v2180_v32 = vld [vmem:[#allocation7] sm:$0xff]  }
  0xd4   :  { %1288 = vmatprep.subr.bf16.mxu0 %v2140_v34  ;;  %v883_v34 = vld [vmem:[%s2368_s4 + $0x2] sm:$0xf] }
  0xd5   :  { %v892_v37 = vrot.slane %v883_v34, %v208_v1  ;;  %v2190_v1 = vld [vmem:[#allocation7 + $0x98] sm:$0xff]  }
  0xd7   :  { %1289 = vmatpush2.bf16.msra.mxu0 %v2138_v36  ;;  %v888_v36 = vrot.slane %v883_v34, %v204_v63  ;;  %v2188_v63 = vld [vmem:[#allocation7 + $0xa0] sm:$0xff]  }
  0xd8   :  { %1290 = vmatprep.subr.bf16.mxu0 %v2146_v38  ;;  %v900_v38 = vrot.slane %v883_v34, %v899_v35 }
  0xdb   :  { %1291 = vmatpush2.bf16.msra.mxu0 %v2144_v40 }
  0xdc   :  { %1292 = vmatprep.subr.bf16.mxu0 %v2152_v42 }
  0xdf   :  { %1293 = vmatpush2.bf16.msra.mxu0 %v2150_v45 }
  0xe0   :  { %1294 = vmatprep.subr.bf16.mxu0 %v2158_v47 }
  0xe3   :  { %1295 = vmatpush2.bf16.msra.mxu0 %v2156_v49 }
  0xe4   :  { %1296 = vmatprep.subr.bf16.mxu0 %v2164_v51 }
  0xe7   :  { %1297 = vmatpush2.bf16.msra.mxu0 %v2162_v53 }
 0x12a   :  { %v726_v55 = vpop.f32.mrf.mxu0 }
 0x12b   :  { %v767_v57 = vpop.f32.mrf.mxu1  ;;  %v727_v4 = vadd.f32 %v726_v55, %v205_v2  ;;  %v2182_v55 = vld [vmem:[#allocation7 + $0xb8] sm:$0xff]   ;;  %v895_v2 = vsub.s32 2, %v2333_v43 }
 0x12c   :  { %v728_v56 = vpop.f32.mrf.mxu0 }
 0x12d   :  { %v769_v59 = vpop.f32.mrf.mxu1  ;;  %v729_v5 = vadd.f32 %v728_v56, %v209_v3  ;;  %v768_v6 = vadd.f32 %v767_v57, %v727_v4  ;;  %v2183_v57 = vld [vmem:[#allocation7 + $0xf0] sm:$0xff]  }
 0x12e   :  { %v730_v58 = vpop.f32.mrf.mxu0  ;;  %v2191_v3 = vld [vmem:[#allocation7 + $0xd0] sm:$0xff]  }
 0x12f   :  { %v771_v61 = vpop.f32.mrf.mxu1  ;;  %v770_v8 = vadd.f32 %v769_v59, %v729_v5  ;;  %v2184_v59 = vld [vmem:[#allocation7 + $0xb0] sm:$0xff]   ;;  %v896_v5 = vrot.slane %v883_v34, %v895_v2 }
 0x130   :  { %v731_v60 = vpop.f32.mrf.mxu0  ;;  %v2186_v61 = vld [vmem:[#allocation7 + $0xa8] sm:$0xff]   ;;  %v2192_v4 = vld [vmem:[#allocation7 + $0x90] sm:$0xff]  }
 0x131   :  { %v772_v62 = vpop.f32.mrf.mxu1  ;;  %v2185_v60 = vld [vmem:[#allocation7 + $0xe8] sm:$0xff]  }
 0x132   :  { %v2187_v62 = vld [vmem:[#allocation7 + $0xe0] sm:$0xff]  }
 0x16a   :  { %v808_v7 = vpop.f32.mrf.mxu0 }
 0x16b   :  { %v809_v9 = vadd.f32 %v808_v7, %v768_v6  ;;  %v2193_v6 = vld [vmem:[#allocation7 + $0xc8] sm:$0xff]  }
 0x16c   :  { %v810_v10 = vpop.f32.mrf.mxu0  ;;  %v2194_v7 = vld [vmem:[#allocation7 + $0x88] sm:$0xff]  }
 0x16d   :  { %v811_v11 = vadd.f32 %v810_v10, %v770_v8  ;;  %v815_v12 = vmax.f32 %v809_v9, 0.0  ;;  %v2195_v9 = vld [vmem:[#allocation7 + $0xc0] sm:$0xff]  }
 0x16e   :  { %v812_v13 = vpop.f32.mrf.mxu0  ;;  %v2196_v10 = vld [vmem:[#allocation7 + $0x80] sm:$0xff]  }
 0x16f   :  { %v816_v14 = vmax.f32 %v811_v11, 0.0  ;;  %v817_v18 = vpack.c.bf16 %v815_v12, %v815_v12 }
 0x170   :  { %v813_v15 = vpop.f32.mrf.mxu0 }
 0x171   :  { %v818_v16 = vpack.c.bf16 %v816_v14, %v816_v14 }
 0x173   :  { %1257 = vmatprep.mubr.bf16.mxu1 %v818_v16  ;;  %1298 = vmatprep.mubr.bf16.mxu0 %v818_v16 }
 0x174   :  { %1258 = vmatmul.mubr.bf16.vlgmr.msra.gmra.mxu1 %v817_v18  ;;  %1299 = vmatmul.mubr.bf16.vlgmr.msra.gmra.mxu0 %v817_v18 }
 0x175   :  { %1870 = vmatpush3.bf16.msra.mxu1 %v2166_v17  ;;  %v1836_v17 = vld [vmem:[%s2368_s4 + $0x6] ss:$0 sm:$0xff] }
 0x176   :  { %1871 = vmatprep.subr.bf16.mxu1 %v2167_v19 }
 0x179   :  { %1872 = vmatpush3.bf16.msra.mxu1 %v2168_v20 }
 0x17a   :  { %1873 = vmatprep.subr.bf16.mxu1 %v2169_v21 }
 0x17d   :  { %1874 = vmatpush3.bf16.msra.mxu1 %v2170_v22 }
 0x17e   :  { %1875 = vmatprep.subr.bf16.mxu1 %v2171_v23 }
 0x181   :  { %1876 = vmatpush3.bf16.msra.mxu1 %v2172_v24 }
 0x182   :  { %1877 = vmatprep.subr.bf16.mxu1 %v2173_v25 }
 0x185   :  { %1878 = vmatpush3.bf16.msra.mxu1 %v2174_v26 }
 0x186   :  { %1879 = vmatprep.subr.bf16.mxu1 %v2175_v27 }
 0x189   :  { %1880 = vmatpush3.bf16.msra.mxu1 %v2176_v28 }
 0x18a   :  { %1881 = vmatprep.subr.bf16.mxu1 %v2177_v29 }
 0x18d   :  { %1882 = vmatpush3.bf16.msra.mxu1 %v2178_v30 }
 0x18e   :  { %1883 = vmatprep.subr.bf16.mxu1 %v2179_v31 }
 0x191   :  { %1884 = vmatpush3.bf16.msra.mxu1 %v2180_v32 }
 0x192   :  { %1891 = vmatprep.subr.bf16.mxu1 %v2181_v33 }
 0x234   :  { %v1259_v39 = vpop.f32.mrf.mxu1  ;;  %v1300_v40 = vpop.f32.mrf.mxu0 }
 0x235   :  { %v1260_v41 = vadd.f32 %v1259_v39, %v888_v36  ;;  %v1301_v8 = vadd.f32 %v1300_v40, %v896_v5 }
 0x236   :  { %v1261_v42 = vpop.f32.mrf.mxu1  ;;  %v1302_v44 = vpop.f32.mrf.mxu0 }
 0x237   :  { %v1262_v45 = vadd.f32 %v1261_v42, %v892_v37  ;;  %v1303_v46 = vadd.f32 %v1302_v44, %v900_v38  ;;  %v1307_v47 = vmax.f32 %v1260_v41, 0.0  ;;  %v1309_v11 = vmax.f32 %v1301_v8, 0.0 }
 0x238   :  { %v1263_v48 = vpop.f32.mrf.mxu1  ;;  %v1304_v49 = vpop.f32.mrf.mxu0 }
 0x239   :  { %v1308_v50 = vmax.f32 %v1262_v45, 0.0  ;;  %v1310_v51 = vmax.f32 %v1303_v46, 0.0  ;;  %v1311_v56 = vpack.c.bf16 %v1307_v47, %v1307_v47  ;;  %v1313_v12 = vpack.c.bf16 %v1309_v11, %v1309_v11 }
 0x23a   :  { %v1264_v52 = vpop.f32.mrf.mxu1  ;;  %v1305_v53 = vpop.f32.mrf.mxu0 }
 0x23b   :  { %v1312_v54 = vpack.c.bf16 %v1308_v50, %v1308_v50  ;;  %v1314_v58 = vpack.c.bf16 %v1310_v51, %v1310_v51 }
 0x23d   :  { %1610 = vmatprep.mubr.bf16.mxu1 %v1312_v54 }
 0x23e   :  { %1611 = vmatmul.mubr.bf16.vlgmr.msra.gmra.mxu1 %v1311_v56 }
 0x23f   :  { %1892 = vmatpush3.bf16.msra.mxu1 %v2182_v55  ;;  %1650 = vmatprep.mubr.bf16.mxu1 %v1314_v58 }
 0x240   :  { %1893 = vmatprep.subr.bf16.mxu1 %v2183_v57 }
 0x243   :  { %1894 = vmatpush3.bf16.msra.mxu1 %v2184_v59 }
 0x244   :  { %1895 = vmatprep.subr.bf16.mxu1 %v2185_v60 }
 0x247   :  { %1896 = vmatpush3.bf16.msra.mxu1 %v2186_v61 }
 0x248   :  { %1897 = vmatprep.subr.bf16.mxu1 %v2187_v62 }
 0x24b   :  { %1898 = vmatpush3.bf16.msra.mxu1 %v2188_v63 }
 0x24c   :  { %1899 = vmatprep.subr.bf16.mxu1 %v2189_v0 }
 0x24f   :  { %1900 = vmatpush3.bf16.msra.mxu1 %v2190_v1 }
 0x250   :  { %1901 = vmatprep.subr.bf16.mxu1 %v2191_v3 }
 0x253   :  { %1902 = vmatpush3.bf16.msra.mxu1 %v2192_v4 }
 0x254   :  { %1903 = vmatprep.subr.bf16.mxu1 %v2193_v6 }
 0x257   :  { %1904 = vmatpush3.bf16.msra.mxu1 %v2194_v7 }
 0x258   :  { %1905 = vmatprep.subr.bf16.mxu1 %v2195_v9 }
 0x25b   :  { %1906 = vmatpush3.bf16.msra.mxu1 %v2196_v10 }
 0x25e   :  { %1651 = vmatmul.mubr.bf16.vlgmr.msra.gmra.mxu1 %v1313_v12 }
 0x2fe   :  { %v1885_v43 = vpop.f32.mrf.mxu1 }
 0x300   :  { %v1886_v13 = vpop.f32.mrf.mxu1 }
 0x301   :  { %v1887_v16 = vadd.f32 %v1886_v13, %v1885_v43 }
 0x302   :  { %v1888_v14 = vpop.f32.mrf.mxu1 }
 0x303   :  { %v1613_v20 = vadd.f32 %v1887_v16, %v1836_v17 }
 0x304   :  { %v1889_v15 = vpop.f32.mrf.mxu1 }
 0x31e   :  { %v1907_v18 = vpop.f32.mrf.mxu1 }
 0x320   :  { %v1908_v19 = vpop.f32.mrf.mxu1 }
 0x321   :  { %v1909_v21 = vadd.f32 %v1908_v19, %v1907_v18 }
 0x322   :  { %v1910_v22 = vpop.f32.mrf.mxu1 }
 0x323   :  { %v1653_v23 = vadd.f32 %v1909_v21, %v1613_v20 }
 0x324   :  { %v1911_v24 = vpop.f32.mrf.mxu1 }
 0x325   :  { %1658 = vst [vmem:[#allocation8] sm:$0x3] %v1653_v23 }
 0x326   :  { %2268 = shalt.err (!%p2265_p5)
}
 0x327   :  { %1668 = dma.vmem_to_hbm [thread:$0]  %s1666_s21, 32, %s2369_s5, [#allocation4]  }
 0x328   :  { %2281 = dma.done.wait [#allocation4], 32  }
 0x329   :  { %2282 = vsyncadd [#allocation4], 4294967264 }
 0x32a   :  { %1672 = vsyncpa [#allocation3], 1 }
 0x32b   :  { %1673 = vsyncpa [#allocation6], 1 }
 0x32c   :  { %1674 = vsyncpa [#allocation4], 1 }

</bundles_post_ra>
